<compile_context>
chip_gen: v5e
topology: v5e:2x2
jax: 0.10.0
libtpu: 0.0.40
codegen_flags: <defaults>
</compile_context>

<pallas_src>
import math

import jax
import jax.numpy as jnp
import numpy as np
from jax.experimental import pallas as pl
from jax.experimental.pallas import tpu as pltpu


def _round_up(x, m):
    return -(-int(x) // int(m)) * int(m)


def _make_apev_kernel(cutoff: float):
    inv_rc_pi = math.pi / cutoff

    def kernel(pair_ref, prm_ref, y_ref):
        pair = pair_ref[...]                  # (2, TILE) f32: row0 = dist, row1 = dest mask
        d = pair[0:1, :]                      # (1, TILE)
        m = pair[1:2, :]                      # (1, TILE)
        prm = prm_ref[...]                    # (OUT_pad, 2): col0 = -EtaR, col1 = ShfR
        neg_eta = prm[:, 0:1]                 # (OUT_pad, 1)
        shf = prm[:, 1:2]                     # (OUT_pad, 1)
        # TorchANI cosine cutoff; the global 0.25 factor and the destination-validity
        # mask are folded into the cheap (1, TILE) column term so the (OUT, TILE)
        # body is a single exp (EUP slot) plus a couple of VPU muls.
        fc_m = m * jnp.where(d <= cutoff,
                             0.125 * jnp.cos(d * inv_rc_pi) + 0.125,
                             0.0)             # (1, TILE)
        t = d - shf                           # (OUT_pad, TILE)
        y_ref[...] = (jnp.exp(neg_eta * (t * t)) * fc_m).astype(y_ref.dtype)

    return kernel


def apev_forward(connectivity, coords, eta_r, shf_r, cutoff, output_size,
                 *, out_dtype=jnp.float32, transposed_output=False, tile=None):
    """JAX/Pallas reimplementation of a2mdnet APEV.forward.

    connectivity: (n_batch, n_connectivity, 2) int32; -1 in column 0 marks padding.
    coords:       (n_batch, n_atoms, 3) float32.

    Returns (connectivity, y) with
      y: (n_batch, n_connectivity, output_size)     if not transposed_output
      y: (output_size, n_batch * n_connectivity)    if transposed_output (lane-dense;
         hand straight to the downstream matmul and fold the transpose into its
         dimension_numbers -- avoids a full extra HBM pass over the AEV).
    """
    n_batch, n_conn = connectivity.shape[0], connectivity.shape[1]
    n_atoms = coords.shape[1]
    n_total = n_batch * n_conn

    conn_f = connectivity.reshape(n_total, 2)
    coords_f = coords.reshape(n_batch * n_atoms, 3).astype(jnp.float32)
    mask = conn_f[:, 0] != -1                                   # destination validity

    offsets = jnp.repeat(jnp.arange(n_batch, dtype=conn_f.dtype) * n_atoms, n_conn)
    conn_off = conn_f + offsets[:, None]

    # torch masked_scatter_(mask_output, rad_terms) consumes the SOURCE row-major:
    # the k-th valid destination row receives rad_terms computed on source row k of
    # the zero-filled acceptor/donor arrays.  Reproduce that with the cumsum rank
    # permutation, composing all gathers into a single pass.
    src_idx = jnp.clip(jnp.cumsum(mask.astype(jnp.int32)) - 1, 0, None)
    conn_src = conn_off[src_idx]                                # (n_total, 2)
    valid_src = mask[src_idx]                                   # source-row validity
    a_idx = jnp.where(valid_src, conn_src[:, 0], 0)
    d_idx = jnp.where(valid_src, conn_src[:, 1], 0)
    diff = jnp.where(valid_src[:, None], coords_f[a_idx] - coords_f[d_idx], 0.0)
    dist = jnp.sqrt(jnp.sum(diff * diff, axis=-1))              # (n_total,)
    mask_f = mask.astype(jnp.float32)

    # radial_terms (TorchANI ANI-1 form): 0.25 * exp(-EtaR*(d-ShfR)^2) * fc(d),
    # flattened with eta as the outer index and shf inner.
    n_eta, n_shf = int(eta_r.shape[0]), int(shf_r.shape[0])
    assert n_eta * n_shf == output_size
    eta_flat = np.repeat(np.asarray(eta_r, np.float32), n_shf)   # (output_size,)
    shf_flat = np.tile(np.asarray(shf_r, np.float32), n_eta)     # (output_size,)

    bytes_per_out = np.dtype(out_dtype).itemsize
    sub = 32 // bytes_per_out                                    # 8 (f32) / 16 (bf16)
    out_pad = _round_up(output_size, sub)                        # unmasked sublane stores

    # TODO(synk): EtaR/ShfR could be baked as in-kernel constants; kept as one tiny
    #             resident (OUT_pad, 2) operand because non-splat vector constants are
    #             a Mosaic lowering risk.  The negation is folded into the operand.
    params = np.zeros((out_pad, 2), np.float32)
    params[:output_size, 0] = -eta_flat
    params[:output_size, 1] = shf_flat
    params = jnp.asarray(params)

    # ---- tile sizing: ~2 MiB output blocks per grid step, >=4 steps on big inputs,
    #      double-buffered output block <= 24 MiB (v7x VMEM safety).
    if tile is None:
        tile = (2 << 20) // (out_pad * bytes_per_out)
    tile_eff = max(128, (int(tile) // 128) * 128)
    tile_eff = min(tile_eff, max(1024, _round_up(pl.cdiv(n_total, 4), 128)))
    tile_eff = min(tile_eff, max(128, ((12 << 20) // (out_pad * bytes_per_out) // 128) * 128))
    tile_eff = min(tile_eff, _round_up(n_total, 128))
    n_pad = pl.cdiv(n_total, tile_eff) * tile_eff
    pad = n_pad - n_total

    packed = jnp.stack([dist, mask_f], axis=0)                   # (2, n_total) f32
    if pad:
        packed = jnp.pad(packed, ((0, 0), (0, pad)))             # (2, n_pad)

    # Scoped-VMEM override: compare against the smallest generation default (16 MiB,
    # v5e; v6e/v7x default to 32 MiB) so it fires wherever needed; cap at 48 MiB so
    # v7x (64 MiB physical VMEM) keeps internal-scratch headroom.
    block_bytes = (2 * tile_eff * 4) + (out_pad * tile_eff * bytes_per_out) + (out_pad * 2 * 4)
    cp_kwargs = dict(dimension_semantics=("parallel",))
    # TODO(synk): use pltpu.CORE_PARALLEL on v7x (2 TensorCores); "parallel" is kept
    #             because chip-generation detection is not robust in-script.
    if 2 * block_bytes > (16 << 20):
        cp_kwargs["vmem_limit_bytes"] = int(min(2 * block_bytes + (4 << 20), 48 << 20))

    y_t = pl.pallas_call(
        _make_apev_kernel(float(cutoff)),
        out_shape=jax.ShapeDtypeStruct((out_pad, n_pad), out_dtype),
        grid_spec=pltpu.PrefetchScalarGridSpec(
            num_scalar_prefetch=0,
            grid=(n_pad // tile_eff,),
            in_specs=[
                pl.BlockSpec((2, tile_eff), lambda i: (0, i)),       # [dist; mask]
                pl.BlockSpec((out_pad, 2), lambda i: (0, 0)),        # [-EtaR | ShfR]
            ],
            out_specs=pl.BlockSpec((out_pad, tile_eff), lambda i: (0, i)),
        ),
        compiler_params=pltpu.CompilerParams(**cp_kwargs),
    )(packed, params)

    if transposed_output:
        # Lane-dense layout kept end-to-end; no standalone transpose pass.
        return connectivity, y_t[:output_size, :n_total]
    # Module-contract layout.  NOTE: this transpose is a full extra HBM pass over the
    # AEV -- prefer transposed_output=True when the consumer can take the lane-dense
    # layout (fold the transpose into its matmul for free on the MXU).
    y = y_t[:output_size, :n_total].T.reshape(n_batch, n_conn, output_size)
    return connectivity, y


def apev_reference_numpy(connectivity, coords, eta_r, shf_r, cutoff, output_size):
    """Literal numpy emulation of the torch forward (index_select + masked_scatter_)."""
    conn = np.asarray(connectivity)
    crd = np.asarray(coords, dtype=np.float32)
    n_batch, n_conn, _ = conn.shape
    n_atoms = crd.shape[1]
    conn_f = conn.reshape(-1, 2)
    coords_f = crd.reshape(-1, 3)
    n_total = conn_f.shape[0]
    mask = conn_f[:, 0] != -1
    offs = np.repeat(np.arange(n_batch) * n_atoms, n_conn)
    conn_off = conn_f + offs[:, None]

    coords_acc = np.zeros((n_total, 3), np.float32)
    coords_don = np.zeros((n_total, 3), np.float32)
    # masked_scatter_: row-major fill of masked rows with the compacted source rows.
    coords_acc[mask] = coords_f[conn_off[mask, 0]]
    coords_don[mask] = coords_f[conn_off[mask, 1]]
    dist = np.sqrt(((coords_acc - coords_don) ** 2).sum(-1))

    eta = np.asarray(eta_r, np.float32)
    shf = np.asarray(shf_r, np.float32)
    fc = np.where(dist <= cutoff, 0.5 * np.cos(np.pi * dist / cutoff) + 0.5, 0.0)
    rad = 0.25 * np.exp(-eta[:, None, None] * (dist[None, None, :] - shf[None, :, None]) ** 2)
    rad = (rad * fc[None, None, :]).reshape(output_size, n_total).T     # (n_total, OUT)

    # y.masked_scatter_(mask_output, rad_terms): consume rad_terms row-major, taking
    # exactly n_valid*output_size elements into the True positions of the mask.
    y = np.zeros(n_total * output_size, np.float32)
    flat_mask = np.repeat(mask, output_size)
    y[flat_mask] = rad.reshape(-1)[: int(flat_mask.sum())]
    return y.reshape(n_batch, n_conn, output_size)


if __name__ == "__main__":
    key = jax.random.PRNGKey(0)
    n_batch, n_atoms, n_conn = 2, 6, 8
    n_eta, n_shf = 4, 8
    output_size = n_eta * n_shf
    cutoff = 4.6

    eta_r = jnp.array([4.0, 8.0, 16.0, 32.0], dtype=jnp.float32)
    shf_r = jnp.linspace(0.5, cutoff - 0.5, n_shf, dtype=jnp.float32)

    k_coords, k_conn = jax.random.split(key)
    coords = 1.5 * jax.random.normal(k_coords, (n_batch, n_atoms, 3), dtype=jnp.float32)
    conn = jax.random.randint(k_conn, (n_batch, n_conn, 2), 0, n_atoms, dtype=jnp.int32)
    # leading + interleaved padding rows (-1) to exercise the masked_scatter_ ordering
    invalid = jnp.zeros((n_batch, n_conn), dtype=bool)
    invalid = invalid.at[0, 0].set(True).at[0, 1].set(True).at[0, 4].set(True)
    invalid = invalid.at[1, 2].set(True).at[1, 7].set(True)
    conn = jnp.where(invalid[..., None], jnp.int32(-1), conn)

    # Pallas kernel, module-contract layout.
    conn_out, y = apev_forward(conn, coords, eta_r, shf_r, cutoff, output_size)
    jax.block_until_ready(y)

    # Torch-faithful reference (literal index_select + masked_scatter_ emulation).
    y_ref = apev_reference_numpy(conn, coords, eta_r, shf_r, cutoff, output_size)
    assert y.shape == (n_batch, n_conn, output_size)
    assert np.allclose(np.asarray(y), y_ref, atol=1e-5, rtol=1e-5)
    assert np.array_equal(np.asarray(conn_out), np.asarray(conn))

    # Lane-dense path (no standalone transpose pass) -- preferred for downstream matmuls.
    _, y_t = apev_forward(conn, coords, eta_r, shf_r, cutoff, output_size,
                          transposed_output=True)
    jax.block_until_ready(y_t)
    assert y_t.shape == (output_size, n_batch * n_conn)
    assert np.allclose(np.asarray(y_t).T.reshape(n_batch, n_conn, output_size),
                       y_ref, atol=1e-5, rtol=1e-5)

    # Optional bf16 output (halves HBM write bytes of this write-bound kernel).
    _, y_bf = apev_forward(conn, coords, eta_r, shf_r, cutoff, output_size,
                           out_dtype=jnp.bfloat16, transposed_output=True)
    jax.block_until_ready(y_bf)
    y_bf32 = np.asarray(y_bf).astype(np.float32).T.reshape(n_batch, n_conn, output_size)
    assert np.allclose(y_bf32, y_ref, atol=1e-2, rtol=1e-2)

    print("KERNEL_OK")
</pallas_src>

<mosaic_0001>
module attributes {stable_mosaic.version = 11 : i64} {
  func.func @kernel(%arg0: i32, %arg1: memref<2x128xf32, #tpu.memory_space<vmem>>, %arg2: memref<32x2xf32, #tpu.memory_space<vmem>>, %arg3: memref<32x128xf32, #tpu.memory_space<vmem>>) attributes {dimension_semantics = [#tpu.dimension_semantics<parallel>], iteration_bounds = array<i64: 1>, scalar_prefetch = 0 : i64, scratch_operands = 0 : i64, tpu.core_type = #tpu.core_type<tc>, window_params = [{transform_indices = @transform_0, window_bounds = array<i64: 2, 128>}, {pipeline_mode = #tpu.pipeline_mode<synchronous>, transform_indices = @transform_1, window_bounds = array<i64: 32, 2>}, {transform_indices = @transform_2, window_bounds = array<i64: 32, 128>}]} {
    %c0 = arith.constant 0 : index
    %c0_0 = arith.constant 0 : index
    %0 = vector.load %arg1[%c0, %c0_0] : memref<2x128xf32, #tpu.memory_space<vmem>>, vector<2x128xf32>
    %1 = vector.extract_strided_slice %0 {offsets = [0, 0], sizes = [1, 128], strides = [1, 1]} : vector<2x128xf32> to vector<1x128xf32>
    %2 = vector.extract_strided_slice %0 {offsets = [1, 0], sizes = [1, 128], strides = [1, 1]} : vector<2x128xf32> to vector<1x128xf32>
    %c0_1 = arith.constant 0 : index
    %c0_2 = arith.constant 0 : index
    %3 = vector.load %arg2[%c0_1, %c0_2] : memref<32x2xf32, #tpu.memory_space<vmem>>, vector<32x2xf32>
    %4 = vector.extract_strided_slice %3 {offsets = [0, 0], sizes = [32, 1], strides = [1, 1]} : vector<32x2xf32> to vector<32x1xf32>
    %5 = vector.extract_strided_slice %3 {offsets = [0, 1], sizes = [32, 1], strides = [1, 1]} : vector<32x2xf32> to vector<32x1xf32>
    %cst = arith.constant 4.600000e+00 : f32
    %6 = vector.broadcast %cst : f32 to vector<1x128xf32>
    %7 = arith.cmpf ole, %1, %6 : vector<1x128xf32>
    %cst_3 = arith.constant 0.682954907 : f32
    %8 = vector.broadcast %cst_3 : f32 to vector<1x128xf32>
    %9 = arith.mulf %1, %8 : vector<1x128xf32>
    %10 = math.cos %9 : vector<1x128xf32>
    %cst_4 = arith.constant 1.250000e-01 : f32
    %11 = vector.broadcast %cst_4 : f32 to vector<1x128xf32>
    %12 = arith.mulf %11, %10 : vector<1x128xf32>
    %cst_5 = arith.constant 1.250000e-01 : f32
    %13 = vector.broadcast %cst_5 : f32 to vector<1x128xf32>
    %14 = arith.addf %12, %13 : vector<1x128xf32>
    %cst_6 = arith.constant 0.000000e+00 : f32
    %15 = vector.broadcast %cst_6 : f32 to vector<1x128xf32>
    %16 = arith.select %7, %14, %15 : vector<1x128xi1>, vector<1x128xf32>
    %17 = arith.mulf %2, %16 : vector<1x128xf32>
    %18 = vector.broadcast %1 : vector<1x128xf32> to vector<32x128xf32>
    %19 = vector.broadcast %5 : vector<32x1xf32> to vector<32x128xf32>
    %20 = arith.subf %18, %19 : vector<32x128xf32>
    %21 = arith.mulf %20, %20 : vector<32x128xf32>
    %22 = vector.broadcast %4 : vector<32x1xf32> to vector<32x128xf32>
    %23 = arith.mulf %22, %21 : vector<32x128xf32>
    %24 = math.exp %23 : vector<32x128xf32>
    %25 = vector.broadcast %17 : vector<1x128xf32> to vector<32x128xf32>
    %26 = arith.mulf %24, %25 : vector<32x128xf32>
    %c0_7 = arith.constant 0 : index
    %c0_8 = arith.constant 0 : index
    %27 = vector.load %arg3[%c0_7, %c0_8] : memref<32x128xf32, #tpu.memory_space<vmem>>, vector<32x128xf32>
    tpu.vector_store %arg3[%c0_7, %c0_8], %26 {strides = array<i32>} : memref<32x128xf32, #tpu.memory_space<vmem>>, vector<32x128xf32>,
    return
  }
  func.func @transform_0(%arg0: i32) -> (i32, i32) {
    %c0_i32 = arith.constant 0 : i32
    %c0_i32_0 = arith.constant 0 : i32
    return %c0_i32, %arg0 : i32, i32
  }
  func.func @transform_1(%arg0: i32) -> (i32, i32) {
    %c0_i32 = arith.constant 0 : i32
    %c0_i32_0 = arith.constant 0 : i32
    %c0_i32_1 = arith.constant 0 : i32
    return %c0_i32, %c0_i32_0 : i32, i32
  }
  func.func @transform_2(%arg0: i32) -> (i32, i32) {
    %c0_i32 = arith.constant 0 : i32
    %c0_i32_0 = arith.constant 0 : i32
    return %c0_i32, %arg0 : i32, i32
  }
}

</mosaic_0001>

<bundles_post_ra>
// kernel: tpu_custom_call.1
= control target key start
LH: loop header
LB: loop body
LE: loop exit
PB: predicated region body
PF: predicated region fallthrough
CT: control target
= control target key end

     0   :  { %v317_v2 = vmov 1   ;;  %v318_v3 = vmov 0   ;;  %s428_s0 = inlined_call_operand.vmem [shape: f32[2,128], index: 0, kind: input, shape index: {}]   ;;  %s429_s1 = inlined_call_operand.vmem [shape: f32[32,2], index: 1, kind: input, shape index: {}]   ;;  %s430_s2 = inlined_call_operand.hbm [shape: f32[32,128], index: 2, kind: output, shape index: {}]  }
   0x1   :  { %v15_v0 = vld [vmem:[%s429_s1 + $0x10] sm:$0xff]  ;;  %v13_v1 = vld [vmem:[%s429_s1] sm:$0xff]  ;;  %279 = vset.pattern.permute.xlu1 %v317_v2  ;;  %278 = vset.pattern.permute.xlu0 %v317_v2 }
   0x2   :  { %193 = vperm.xlu1 %279, %v15_v0   ;;  %183 = vperm.xlu0 %278, %v13_v1   ;;  %v353_v4 = vld [vmem:[%s428_s0] sm:$0x3] }
   0x3   :  { %280 = vset.pattern.permute.xlu2 %v318_v3 }
   0x4   :  { %7 = vsyncpa [#allocation3], 0  ;;  %210 = vperm.xlu2 %280, %v13_v1   ;;  %v356_v5 = vmul.f32 0.6829549, %v353_v4  ;;  %v16_v7 = vld [vmem:[%s429_s1 + $0x18] sm:$0xff]  ;;  %v14_v8 = vld [vmem:[%s429_s1 + $0x8] sm:$0xff] }
   0x5   :  { %v319_v19 = vmov 683565275   ;;  %v320_v21 = vmov 2475754826   ;;  %v321_v23 = vmov 2131351028  }
   0x6   :  { %v22_v6 = vand.u32 2139095040, %v356_v5  ;;  %v19_v9 = vand.u32 2147483647, %v356_v5  ;;  %v322_v25 = vmov 2102212464   ;;  %vm21_vm12 = vcmp.lt.s32.totalorder %v356_v5, 0 }
   0x7   :  { %v323_v27 = vmov 920167782   ;;  %v324_v34 = vmov 1326507024   ;;  %s325_s0 = smov [#allocation2]   ;;  %s252_s21 = sshll.u32 %s430_s2, 4  ;;  %s253_s21 = int_to_ptr.hbm [resolvable:$true] %s252_s21 }
   0x8   :  { %v23_v10 = vshrl.u32 %v22_v6, 23  ;;  %v26_v12 = vand.u32 8388607, %v19_v9  ;;  %vm412_vm13 = vcmp.le.f32.partialorder %v19_v9, 0.7853982  ;;  %s250_s1 = sshll.u32 %s325_s0, 4  ;;  %s251_s1 = int_to_ptr.vmem [resolvable:$true] %s250_s1 }
   0x9   :  { %s326_s22 = smov 128   ;;  %s327_s23 = smov 8  }
   0xa   :  { %198 = vperm.xlu1 %279, %v16_v7   ;;  %188 = vperm.xlu0 %278, %v14_v8   ;;  %v264_v11 = vadd.s32 4294967169, %v23_v10  ;;  %v27_v14 = vor.u32 8388608, %v26_v12 }
   0xc   :  { %214 = vperm.xlu2 %280, %v14_v8   ;;  %v29_v13 = vadd.s32 1, %v264_v11  ;;  %v372_v29 = vshll.u32 %v27_v14, 8 }
   0xe   :  { %vm30_vm0 = vcmp.gt.s32.totalorder %v29_v13, 0  ;;  %v68_v46 = vand.u32 65535, %v372_v29  ;;  %v69_v49 = vshrl.u32 %v372_v29, 16 }
   0xf   :  { %v31_v15 = vsel %vm30_vm0, %v29_v13, 0 }
  0x10   :  { %v33_v16 = vand.u32 31, %v31_v15  ;;  %v368_v17 = vshrl.u32 %v31_v15, 5 }
  0x12   :  { %282 = vset.pattern.permute.xlu1 %v318_v3  ;;  %281 = vset.pattern.permute.xlu0 %v318_v3  ;;  %v34_v18 = vsub.s32 32, %v33_v16  ;;  %v36_v20 = vshll.u32 %v319_v19, %v33_v16  ;;  %v39_v22 = vshll.u32 %v320_v21, %v33_v16  ;;  %v42_v24 = vshll.u32 %v321_v23, %v33_v16 }
  0x13   :  { %222 = vperm.xlu1 %282, %v16_v7   ;;  %218 = vperm.xlu0 %281, %v15_v0   ;;  %v45_v26 = vshll.u32 %v322_v25, %v33_v16  ;;  %v48_v28 = vshll.u32 %v323_v27, %v33_v16  ;;  %vm51_vm1 = vcmp.lt.s32.totalorder %v368_v17, 1  ;;  %vm53_vm2 = vcmp.lt.s32.totalorder %v368_v17, 3 }
  0x14   :  { %v37_v30 = vshrl.u32 %v320_v21, %v34_v18  ;;  %v40_v31 = vshrl.u32 %v321_v23, %v34_v18  ;;  %v43_v32 = vshrl.u32 %v322_v25, %v34_v18  ;;  %v46_v33 = vshrl.u32 %v323_v27, %v34_v18 }
  0x15   :  { %v49_v35 = vshrl.u32 %v324_v34, %v34_v18  ;;  %vm54_vm3 = vcmp.lt.s32.totalorder %v368_v17, 4  ;;  %vm52_vm4 = vcmp.lt.s32.totalorder %v368_v17, 2  ;;  %v35_v2 = vshrl.u32 %v319_v19, %v34_v18 }
  0x16   :  { %v38_v36 = vor.u32 %v37_v30, %v36_v20  ;;  %v41_v37 = vor.u32 %v40_v31, %v39_v22  ;;  %v44_v38 = vor.u32 %v43_v32, %v42_v24  ;;  %v47_v39 = vor.u32 %v46_v33, %v45_v26 }
  0x17   :  { %v50_v40 = vor.u32 %v49_v35, %v48_v28 }
  0x18   :  { %v59_v41 = vsel %vm51_vm1, %v38_v36, %v41_v37  ;;  %v60_v42 = vsel %vm54_vm3, %v47_v39, 920167782  ;;  %v63_v43 = vsel %vm51_vm1, %v41_v37, %v44_v38  ;;  %v56_v6 = vsel %vm54_vm3, %v44_v38, 2102212464 }
  0x19   :  { %v61_v44 = vsel %vm53_vm2, %v44_v38, %v60_v42  ;;  %v64_v45 = vsel %vm54_vm3, %v50_v40, 1326507024  ;;  %v55_v18 = vsel %vm51_vm1, %v35_v2, %v38_v36  ;;  %v57_v19 = vsel %vm53_vm2, %v41_v37, %v56_v6 }
  0x1a   :  { %v62_v47 = vsel %vm52_vm4, %v59_v41, %v61_v44  ;;  %v65_v48 = vsel %vm53_vm2, %v47_v39, %v64_v45  ;;  %v58_v26 = vsel %vm52_vm4, %v55_v18, %v57_v19  ;;  %vm162_vm1 = vweird.f32 %v356_v5 }
  0x1b   :  { %v66_v50 = vsel %vm52_vm4, %v63_v43, %v65_v48  ;;  %v92_v51 = vand.u32 65535, %v62_v47  ;;  %v93_v52 = vshrl.u32 %v62_v47, 16  ;;  %v112_v33 = vmul.u32 %v372_v29, %v58_v26 }
  0x1c   :  { %v70_v53 = vand.u32 65535, %v66_v50  ;;  %v71_v54 = vshrl.u32 %v66_v50, 16  ;;  %vm17_vm2 = vcmp.le.f32.partialorder %v353_v4, 4.6 }
  0x1d   :  { %v94_v55 = vmul.u32 %v92_v51, %v68_v46  ;;  %v95_v56 = vmul.u32 %v93_v52, %v68_v46  ;;  %v96_v60 = vmul.u32 %v92_v51, %v69_v49  ;;  %v97_v61 = vmul.u32 %v93_v52, %v69_v49 }
  0x1e   :  { %v72_v57 = vmul.u32 %v70_v53, %v68_v46  ;;  %v73_v58 = vmul.u32 %v71_v54, %v68_v46  ;;  %v74_v59 = vmul.u32 %v70_v53, %v69_v49  ;;  %v75_v63 = vmul.u32 %v71_v54, %v69_v49 }
  0x1f   :  { %v98_v62 = vshll.u32 %v95_v56, 16  ;;  %v100_v7 = vshll.u32 %v96_v60, 16  ;;  %v99_v16 = vshrl.u32 %v95_v56, 16  ;;  %v101_v24 = vshrl.u32 %v96_v60, 16 }
  0x20   :  { %v76_v0 = vshll.u32 %v73_v58, 16  ;;  %v78_v1 = vshll.u32 %v74_v59, 16  ;;  %v77_v12 = vshrl.u32 %v73_v58, 16  ;;  %v79_v22 = vshrl.u32 %v74_v59, 16 }
  0x21   :  { %vm102_vm5 = vc.u32 %v94_v55, %v98_v62  ;;  %v104_v11 = vadd.s32 %v98_v62, %v94_v55 }
  0x22   :  { %vm80_vm6 = vc.u32 %v72_v57, %v76_v0  ;;  %v82_v8 = vadd.s32 %v76_v0, %v72_v57  ;;  %v103_v10 = vsel %vm102_vm5, 1, %v318_v3 }
  0x23   :  { %v81_v13 = vsel %vm80_vm6, 1, %v318_v3  ;;  %v105_v14 = vadd.s32 %v103_v10, %v97_v61  ;;  %vm106_vm8 = vc.u32 %v104_v11, %v100_v7  ;;  %v108_v28 = vadd.s32 %v104_v11, %v100_v7 }
  0x24   :  { %v83_v15 = vadd.s32 %v81_v13, %v75_v63  ;;  %vm84_vm7 = vc.u32 %v82_v8, %v78_v1  ;;  %v107_v21 = vsel %vm106_vm8, 1, %v318_v3 }
  0x25   :  { %v85_v20 = vsel %vm84_vm7, 1, %v318_v3  ;;  %v109_v25 = vadd.s32 %v107_v21, %v105_v14 }
  0x26   :  { %v87_v23 = vadd.s32 %v85_v20, %v83_v15 }
  0x27   :  { %v110_v30 = vadd.s32 %v109_v25, %v99_v16  ;;  %v180_v25 = vperm.slane %v353_v4, 0 }
  0x28   :  { %v88_v27 = vadd.s32 %v87_v23, %v77_v12 }
  0x29   :  { %v111_v32 = vadd.s32 %v110_v30, %v101_v24 }
  0x2a   :  { %v89_v31 = vadd.s32 %v88_v27, %v79_v22 }
  0x2b   :  { %v115_v34 = vadd.s32 1, %v111_v32 }
  0x2c   :  { %vm114_vm9 = vc.u32 %v89_v31, %v108_v28  ;;  %v113_v43 = vadd.s32 %v108_v28, %v89_v31 }
  0x2d   :  { %v116_v35 = vsel %vm114_vm9, %v115_v34, %v111_v32 }
  0x2e   :  { %v117_v36 = vadd.s32 %v116_v35, %v112_v33 }
  0x30   :  { %v118_v37 = vadd.s32 536870912, %v117_v36 }
  0x32   :  { %v119_v3 = vshrl.u32 %v118_v37, 30 }
  0x34   :  { %v120_v38 = vshll.u32 %v119_v3, 30  ;;  %v143_v60 = vsub.s32 4, %v119_v3 }
  0x36   :  { %v121_v39 = vsub.s32 %v117_v36, %v120_v38  ;;  %v144_v1 = vsel %vm21_vm12, %v143_v60, %v119_v3 }
  0x37   :  { %v146_v9 = vsel %vm412_vm13, 0, %v144_v1 }
  0x38   :  { %vm122_vm10 = vcmp.lt.s32.totalorder %v121_v39, 0  ;;  %v123_v40 = vsub.s32 0, %v121_v39  ;;  %v163_v12 = vand.u32 3, %v146_v9 }
  0x3a   :  { %v124_v41 = vsel %vm122_vm10, %v123_v40, %v121_v39  ;;  %vm165_vm14 = vcmp.eq.s32.totalorder %v163_v12, 0  ;;  %vm168_vm15 = vcmp.eq.s32.totalorder %v163_v12, 2  ;;  %vm164_vm0 = vcmp.lt.s32.totalorder %v163_v12, 2 }
  0x3b   :  { %v125_v17 = vclz %v124_v41 }
  0x3d   :  { %v265_v42 = vadd.s32 4294967294, %v125_v17 }
  0x3f   :  { %vm266_vm11 = vcmp.lt.s32.totalorder %v265_v42, 0 }
  0x40   :  { %v128_v44 = vsel %vm266_vm11, 0, %v265_v42 }
  0x41   :  { %v129_v45 = vsub.s32 32, %v128_v44  ;;  %v130_v46 = vshll.u32 %v121_v39, %v128_v44  ;;  %v133_v47 = vsub.s32 4294967266, %v128_v44 }
  0x43   :  { %v131_v29 = vshrl.u32 %v113_v43, %v129_v45  ;;  %v134_v48 = vadd.s32 127, %v133_v47 }
  0x45   :  { %v132_v49 = vor.u32 %v131_v29, %v130_v46  ;;  %v135_v50 = vshll.u32 %v134_v48, 23 }
  0x47   :  { %v136_v51 = vor.u32 4788187, %v135_v50  ;;  %v139_v52 = vcvt.s32.f32 %v132_v49 }
  0x49   :  { %v137_v53 = vand.u32 2147483647, %v136_v51 }
  0x4b   :  { %v140_v54 = vmul.f32 %v139_v52, %v137_v53 }
  0x4d   :  { %v141_v56 = vxor.u32 2147483648, %v140_v54 }
  0x4f   :  { %v142_v57 = vsel %vm21_vm12, %v141_v56, %v140_v54 }
  0x50   :  { %v145_v58 = vsel %vm412_vm13, %v356_v5, %v142_v57 }
  0x51   :  { %v147_v59 = vmul.f32 %v145_v58, %v145_v58 }
  0x53   :  { %v148_v61 = vmul.f32 -0.001358992, %v147_v59  ;;  %v155_v62 = vmul.f32 -0.00019511016, %v147_v59 }
  0x55   :  { %v149_v63 = vadd.f32 0.041655596, %v148_v61  ;;  %v156_v0 = vadd.f32 0.008332121, %v155_v62 }
  0x57   :  { %v150_v2 = vmul.f32 %v149_v63, %v147_v59  ;;  %v157_v6 = vmul.f32 %v156_v0, %v147_v59 }
  0x59   :  { %v151_v7 = vadd.f32 -0.4999988, %v150_v2  ;;  %v158_v8 = vadd.f32 -0.16666654, %v157_v6 }
  0x5b   :  { %v152_v10 = vmul.f32 %v151_v7, %v147_v59  ;;  %v159_v11 = vmul.f32 %v158_v8, %v147_v59 }
  0x5d   :  { %v153_v13 = vadd.f32 1.0, %v152_v10  ;;  %v160_v14 = vadd.f32 1.0, %v159_v11 }
  0x5e   :  { %v211_v31 = vpop.permute.xlu2 %210 }
  0x5f   :  { %v161_v15 = vmul.f32 %v160_v14, %v145_v58  ;;  %v169_v16 = vxor.u32 2147483648, %v153_v13 }
  0x61   :  { %v166_v18 = vxor.u32 2147483648, %v161_v15  ;;  %v170_v20 = vsel %vm168_vm15, %v169_v16, %v161_v15 }
  0x63   :  { %v167_v19 = vsel %vm165_vm14, %v153_v13, %v166_v18 }
  0x64   :  { %v171_v21 = vsel %vm164_vm0, %v167_v19, %v170_v20 }
  0x65   :  { %v172_v22 = vsel %vm162_vm1, nan, %v171_v21 }
  0x66   :  { %v173_v23 = vmul.f32 0.125, %v172_v22  ;;  %v215_v17 = vpop.permute.xlu2 %214 }
  0x68   :  { %v174_v24 = vadd.f32 0.125, %v173_v23 }
  0x6a   :  { %v175_v28 = vsel %vm17_vm2, %v174_v24, 0.0 }
  0x6b   :  { %v177_v33 = vrot.slane %v175_v28, 7 }
  0x6d   :  { %v179_v36 = vmul.f32 %v177_v33, %v353_v4 }
  0x6f   :  { %v237_v40 = vperm.slane %v179_v36, 1 }
  0x74   :  { %v194_v26 = vpop.permute.xlu1 %193  ;;  %v184_v27 = vpop.permute.xlu0 %183 }
  0x75   :  { %v201_v30 = vsub.f32 %v180_v25, %v184_v27  ;;  %v203_v39 = vsub.f32 %v180_v25, %v194_v26 }
  0x77   :  { %v205_v32 = vmul.f32 %v201_v30, %v201_v30  ;;  %v207_v45 = vmul.f32 %v203_v39, %v203_v39 }
  0x79   :  { %v225_v34 = vmul.f32 %v211_v31, %v205_v32 }
  0x7b   :  { %v229_v35 = vmul.f32 1.442695, %v225_v34 }
  0x7c   :  { %v199_v5 = vpop.permute.xlu1 %198  ;;  %v189_v37 = vpop.permute.xlu0 %188 }
  0x7d   :  { %283 = vpow2.f32 %v229_v35  ;;  %v202_v3 = vsub.f32 %v180_v25, %v189_v37  ;;  %v204_v41 = vsub.f32 %v180_v25, %v199_v5 }
  0x7f   :  { %v206_v38 = vmul.f32 %v202_v3, %v202_v3  ;;  %v208_v47 = vmul.f32 %v204_v41, %v204_v41 }
  0x81   :  { %v226_v42 = vmul.f32 %v215_v17, %v206_v38 }
  0x83   :  { %v284_v43 = vpop.eup %283  ;;  %v231_v44 = vmul.f32 1.442695, %v226_v42 }
  0x84   :  { %v238_v46 = vmul.f32 %v284_v43, %v237_v40 }
  0x85   :  { %285 = vpow2.f32 %v231_v44  ;;  %v223_v29 = vpop.permute.xlu1 %222  ;;  %v219_v48 = vpop.permute.xlu0 %218 }
  0x86   :  { %242 = vst [vmem:[#allocation2] sm:$0xff] %v238_v46  ;;  %v228_v4 = vmul.f32 %v223_v29, %v208_v47  ;;  %v227_v49 = vmul.f32 %v219_v48, %v207_v45 }
  0x88   :  { %v235_v50 = vmul.f32 1.442695, %v228_v4  ;;  %v233_v51 = vmul.f32 1.442695, %v227_v49 }
  0x8a   :  { %287 = vpow2.f32 %v235_v50 }
  0x8b   :  { %v286_v52 = vpop.eup %285  ;;  %289 = vpow2.f32 %v233_v51 }
  0x8c   :  { %v239_v53 = vmul.f32 %v286_v52, %v237_v40 }
  0x8e   :  { %243 = vst [vmem:[#allocation2 + $0x8] sm:$0xff] %v239_v53 }
  0x90   :  { %v288_v54 = vpop.eup %287 }
  0x91   :  { %v290_v55 = vpop.eup %289  ;;  %v241_v56 = vmul.f32 %v288_v54, %v237_v40 }
  0x92   :  { %v240_v57 = vmul.f32 %v290_v55, %v237_v40 }
  0x93   :  { %245 = vst [vmem:[#allocation2 + $0x18] sm:$0xff] %v241_v56 }
  0x94   :  { %244 = vst [vmem:[#allocation2 + $0x10] sm:$0xff] %v240_v57 }
  0x95   :  { %258 = dma.vmem_to_hbm [thread:$0]  %s251_s1, 512, %s253_s21, [#allocation3], %s326_s22, %s326_s22, %s327_s23  }
  0x96   :  { %315 = dma.done.wait [#allocation3], 512  }
  0x97   :  { %316 = vsyncadd [#allocation3], 4294966784 }
  0x98   :  { %263 = vsyncpa [#allocation3], 1 }

</bundles_post_ra>
